<compile_context>
chip_gen: v7x
topology: tpu7x:2x2x1
jax: 0.10.0
libtpu: 0.0.40
codegen_flags: <defaults>
</compile_context>

<pallas_src>
import functools

import jax
import jax.numpy as jnp
from jax.experimental import pallas as pl
from jax.experimental.pallas import tpu as pltpu

# ---------------- configuration (small demo shapes) ----------------
NUM_STOCK = 1        # N  (WealthMax's lamda output contract (T,1) implies N == 1)
NUM_BROWNIAN = 1     # M
HIDDEN_SIZE = 32     # SubNet hidden width (module default 100; small demo size)
GAMMA = 0.1
CE = 0.7             # drift_constraint (>0 so the lamda max(0, .) clamp is non-trivial)
TIME_STEP = 1
DT = 1.0 / 8.0       # T = int(TIME_STEP / DT) = 8 sub-networks / time steps
BATCH = 8            # maps to the 8 sublanes
BN_EPS = 1e-5


# ---------------- Pallas kernel: one fused call, grid=(T,) ----------------
def _wealthmax_fused_kernel(
        state_ref, w1_ref, b1_ref, g1_ref, be1_ref,
        w2_ref, b2_ref, g2_ref, be2_ref,
        w3_ref, b3_ref,
        mu_ref, sigma_ref, zeta_ref, bt_ref,
        action_ref, lamda_ref,
        *, gamma, ce, bn_eps):
    t = pl.program_id(0)
    # First network (t == 0) has no BatchNorm; later ones do.  Scalar float blend
    # (guaranteed-safe lowering, both branches are a handful of VPU ops).
    use_bn = (t > 0).astype(jnp.float32)

    def linear(h, w_ref, b_ref):
        # (B, in) @ (in, out) -> (B, out) on the MXU, f32 accumulate.
        return jnp.dot(h, w_ref[0], preferred_element_type=jnp.float32) + b_ref[0]

    def maybe_bn(h, scale_ref, bias_ref):
        # training-mode BatchNorm1d: batch statistics, biased variance, eps inside sqrt.
        mean = jnp.mean(h, axis=0, keepdims=True)
        var = jnp.mean(jnp.square(h - mean), axis=0, keepdims=True)
        hn = (h - mean) * jax.lax.rsqrt(var + bn_eps) * scale_ref[0] + bias_ref[0]
        return use_bn * hn + (1.0 - use_bn) * h

    # ---- SubNet_t ----
    x = state_ref[0]                                             # (B, F_pad)
    h = jnp.maximum(maybe_bn(linear(x, w1_ref, b1_ref), g1_ref, be1_ref), 0.0)
    h = jnp.maximum(maybe_bn(linear(h, w2_ref, b2_ref), g2_ref, be2_ref), 0.0)
    # last Linear kept in torch-native (out=N, in=H) layout; N == 1 -> lane reduction
    w3 = w3_ref[0]                                               # (1, H)
    y = jnp.sum(h * w3, axis=1, keepdims=True) + b3_ref[0]       # (B, 1)
    action_ref[0] = y

    # ---- calculate_lamda (N = M = 1 analytic form; batch on the lane axis) ----
    mu = mu_ref[0]                                               # (1, B)
    sigma = sigma_ref[0]                                         # (1, B)
    zeta = zeta_ref[0]                                           # (1, B)
    bt = bt_ref[0, 0]                                            # SMEM scalar (loop-invariant)
    s2_inv = 1.0 / (sigma * sigma)                               # inv(sigma sigma^T)
    zt_over = s2_inv * sigma * zeta                              # sigma^{-2} sigma zeta
    num_terms = ce - bt + mu * zt_over                           # (1, B)
    den_terms = mu * mu * s2_inv                                 # (1, B)
    # one cross-lane reduction for both batch means; the 1/B factors cancel.
    sums = jnp.sum(jnp.concatenate([num_terms, den_terms], axis=0),
                   axis=1, keepdims=True)                        # (2, 1)
    lam = jnp.maximum(gamma * sums[0:1, :] / sums[1:2, :] - 1.0, 0.0)   # (1, 1)
    lamda_ref[0] = lam


# ---------------- deterministic market simulator (black box in PyTorch) ----------------
def market_simulator(state, action, param, Bt):
    """Deterministic stand-in: state/Bt unchanged, parameters follow a fixed update
    that does not depend on the action (this is what allows the fused rollout)."""
    mu, sigma = param['geo_param']
    zeta, bt = param['zeta'], param['bt']
    b = state.shape[0]

    def batch(a):  # first call may receive unbatched (N,1)/(N,M)/(M,1) params
        return jnp.broadcast_to(a[None], (b,) + a.shape) if a.ndim == 2 else a

    mu_b, sigma_b, zeta_b = batch(mu), batch(sigma), batch(zeta)
    new_param = {
        'geo_param': (mu_b * 1.01, sigma_b * 0.995 + 1e-3),
        'zeta': zeta_b * 0.99,
        'bt': bt + 5e-4,
    }
    return state, new_param, Bt


# ---------------- plain-JAX trajectory precompute (one lax.scan) ----------------
def _rollout_trajectories(market_sim, x, system_param, num_brownian, num_steps):
    """Emit the per-step *input* (state, mu, sigma, zeta, bt) trajectories, (T, ...)."""
    b = x.shape[0]
    mu0, sigma0 = system_param['geo_param']            # (N,1), (N,M)
    zeta0 = system_param['zeta']                       # (M,1)
    bt0 = system_param['bt']                           # (1,)
    n, m = sigma0.shape

    mu_b = jnp.broadcast_to(mu0[None], (b, n, 1)).astype(jnp.float32)
    sigma_b = jnp.broadcast_to(sigma0[None], (b, n, m)).astype(jnp.float32)
    zeta_b = jnp.broadcast_to(zeta0[None], (b, m, 1)).astype(jnp.float32)
    bt = bt0.astype(jnp.float32)
    Bt = jnp.zeros((b, num_brownian, 1), jnp.float32)
    state = x.astype(jnp.float32)
    action0 = jnp.zeros((b, 1, n), jnp.float32)        # the simulator ignores the action

    def step(carry, _):
        state, mu_b, sigma_b, zeta_b, bt, Bt = carry
        emit = (state, mu_b, sigma_b, zeta_b, bt)
        param = {'geo_param': (mu_b, sigma_b), 'zeta': zeta_b, 'bt': bt}
        new_state, new_param, new_Bt = market_sim(state, action0, param, Bt)
        carry = (new_state, new_param['geo_param'][0], new_param['geo_param'][1],
                 new_param['zeta'], new_param['bt'], new_Bt)
        return carry, emit

    _, traj = jax.lax.scan(step, (state, mu_b, sigma_b, zeta_b, bt, Bt),
                           None, length=num_steps)
    return traj   # (states, mus, sigmas, zetas, bts)


# ---------------- full forward (mirrors WealthMax.forward) ----------------
def wealthmax_forward(x, system_param, net_params, market_sim, *,
                      gamma=GAMMA, ce=CE, time_step=TIME_STEP, dt=DT,
                      num_brownian=NUM_BROWNIAN):
    b = x.shape[0]
    mu0, sigma0 = system_param['geo_param']
    n, m = sigma0.shape
    assert n == 1 and m == 1, "only num_stock == num_brownian == 1 is kernelized"
    num_steps = int(time_step / dt)
    f_in = x.shape[1]
    hdim = net_params['w1'].shape[-1]

    states, mus, sigmas, zetas, bts = _rollout_trajectories(
        market_sim, x, system_param, num_brownian, num_steps)

    # layout padding: make the first-layer contraction dim a multiple of 8 sublanes.
    f_pad = max(8, ((f_in + 7) // 8) * 8)
    states_k = jnp.pad(states, ((0, 0), (0, 0), (0, f_pad - f_in)))
    w1_k = jnp.pad(net_params['w1'], ((0, 0), (0, f_pad - f_in), (0, 0)))

    mu_k = mus[:, :, 0, 0].reshape(num_steps, 1, b)
    sigma_k = sigmas[:, :, 0, 0].reshape(num_steps, 1, b)
    zeta_k = zetas[:, :, 0, 0].reshape(num_steps, 1, b)
    bt_smem = system_param['bt'].astype(jnp.float32).reshape(1, 1)  # fixed bt_init

    row3 = lambda t: (t, 0, 0)
    in_specs = [
        pl.BlockSpec((1, b, f_pad), row3),       # state_t
        pl.BlockSpec((1, f_pad, hdim), row3),    # w1_t   (in, out)
        pl.BlockSpec((1, 1, hdim), row3),        # b1_t
        pl.BlockSpec((1, 1, hdim), row3),        # bn1 scale_t
        pl.BlockSpec((1, 1, hdim), row3),        # bn1 bias_t
        pl.BlockSpec((1, hdim, hdim), row3),     # w2_t   (in, out)
        pl.BlockSpec((1, 1, hdim), row3),        # b2_t
        pl.BlockSpec((1, 1, hdim), row3),        # bn2 scale_t
        pl.BlockSpec((1, 1, hdim), row3),        # bn2 bias_t
        pl.BlockSpec((1, n, hdim), row3),        # w3_t   (out, in) torch layout
        pl.BlockSpec((1, 1, n), row3),           # b3_t
        pl.BlockSpec((1, 1, b), row3),           # mu_t
        pl.BlockSpec((1, 1, b), row3),           # sigma_t
        pl.BlockSpec((1, 1, b), row3),           # zeta_t
        pl.BlockSpec(memory_space=pltpu.MemorySpace.SMEM),   # bt scalar
    ]
    out_specs = (
        pl.BlockSpec((1, b, n), row3),           # actions  (T, B, N)
        pl.BlockSpec((1, 1, 1), row3),           # lamda    (T, 1, 1)
    )

    actions_k, lamda_k = pl.pallas_call(
        functools.partial(_wealthmax_fused_kernel, gamma=gamma, ce=ce, bn_eps=BN_EPS),
        grid=(num_steps,),
        in_specs=in_specs,
        out_specs=out_specs,
        out_shape=(jax.ShapeDtypeStruct((num_steps, b, n), jnp.float32),
                   jax.ShapeDtypeStruct((num_steps, 1, 1), jnp.float32)),
        compiler_params=pltpu.CompilerParams(dimension_semantics=("parallel",)),
    )(states_k, w1_k,
      net_params['b1'], net_params['bn1_scale'], net_params['bn1_bias'],
      net_params['w2'], net_params['b2'], net_params['bn2_scale'], net_params['bn2_bias'],
      net_params['w3'], net_params['b3'],
      mu_k, sigma_k, zeta_k, bt_smem)

    actions = jnp.transpose(actions_k, (1, 0, 2))                 # (B, T, N)
    params_out = {
        'mu': jnp.transpose(mus[..., 0], (1, 2, 0)),              # (B, N, T)
        'sigma': jnp.transpose(sigmas, (1, 0, 2, 3)),             # (B, T, N, M)
        'zeta': jnp.transpose(zetas[..., 0], (1, 0, 2)),          # (B, T, M)
        'bt': bts,                                                # (T, 1)
        'lamda': lamda_k.reshape(num_steps, 1),                   # (T, 1)
    }
    return actions, params_out


# ---------------- parameter init (matches SubNet.weights_init_normal) ----------------
def init_subnet_params(key, num_steps, f_in, hidden, n_out):
    """Linear weights ~ N(0, 1/sqrt(fan_in)), biases 0; BatchNorm affine = (1, 0)."""
    k1, k2, k3 = jax.random.split(key, 3)
    w1 = jax.random.normal(k1, (num_steps, f_in, hidden), jnp.float32) / (f_in ** 0.5)
    w2 = jax.random.normal(k2, (num_steps, hidden, hidden), jnp.float32) / (hidden ** 0.5)
    w3 = jax.random.normal(k3, (num_steps, n_out, hidden), jnp.float32) / (hidden ** 0.5)
    zeros_h = jnp.zeros((num_steps, 1, hidden), jnp.float32)
    ones_h = jnp.ones((num_steps, 1, hidden), jnp.float32)
    return {'w1': w1, 'b1': zeros_h,
            'bn1_scale': ones_h, 'bn1_bias': zeros_h,
            'w2': w2, 'b2': zeros_h,
            'bn2_scale': ones_h, 'bn2_bias': zeros_h,
            'w3': w3, 'b3': jnp.zeros((num_steps, 1, n_out), jnp.float32)}


# ---------------- pure-JAX step-by-step reference (mirrors the PyTorch loop) ----------------
def _reference_forward(x, system_param, net_params, market_sim, *,
                       gamma, ce, time_step, dt, num_brownian):
    hp = jax.lax.Precision.HIGHEST
    num_steps = int(time_step / dt)
    b = x.shape[0]
    mu, sigma = system_param['geo_param']
    zeta, bt = system_param['zeta'], system_param['bt']
    n, m = sigma.shape
    mu_init = jnp.broadcast_to(mu[None], (b, n, 1)).astype(jnp.float32)
    sigma_init = jnp.broadcast_to(sigma[None], (b, n, m)).astype(jnp.float32)
    zeta_init = jnp.broadcast_to(zeta[None], (b, m, 1)).astype(jnp.float32)
    bt_init = bt[None].astype(jnp.float32)              # (1, 1), never updated
    state = x.astype(jnp.float32)
    Bt = jnp.zeros((b, num_brownian, 1), jnp.float32)
    param = system_param

    def bn(h, scale, bias):
        mean = jnp.mean(h, axis=0, keepdims=True)
        var = jnp.mean(jnp.square(h - mean), axis=0, keepdims=True)
        return (h - mean) * jax.lax.rsqrt(var + BN_EPS) * scale + bias

    actions, lamdas = [], []
    for t in range(num_steps):
        # calculate_lamda (general batched form, as written in the PyTorch module)
        s2_inv = jnp.linalg.inv(sigma_init @ jnp.swapaxes(sigma_init, 1, 2))
        zt_over = s2_inv @ (sigma_init @ zeta_init)
        num = gamma * jnp.mean(ce - bt_init + jnp.swapaxes(mu_init, 1, 2) @ zt_over, axis=0)
        den = jnp.mean(jnp.square(mu_init) * s2_inv, axis=0)
        lam = jnp.maximum(jnp.squeeze(num / den - 1.0, axis=1), 0.0)        # (1,)
        lamdas.append(lam)
        # SubNet_t
        h = jnp.dot(state, net_params['w1'][t], precision=hp) + net_params['b1'][t][0]
        if t > 0:
            h = bn(h, net_params['bn1_scale'][t][0], net_params['bn1_bias'][t][0])
        h = jnp.maximum(h, 0.0)
        h = jnp.dot(h, net_params['w2'][t], precision=hp) + net_params['b2'][t][0]
        if t > 0:
            h = bn(h, net_params['bn2_scale'][t][0], net_params['bn2_bias'][t][0])
        h = jnp.maximum(h, 0.0)
        y = jnp.dot(h, net_params['w3'][t].T, precision=hp) + net_params['b3'][t][0]  # (B, N)
        actions.append(y[:, None, :])
        state, param, Bt = market_sim(state, actions[-1], param, Bt)
        mu_init = param['geo_param'][0]
        sigma_init = param['geo_param'][1]
        zeta_init = param['zeta']
        # NB: bt_init intentionally not updated (matches the PyTorch source).
    return (jnp.stack(actions, axis=1)[:, :, 0, :],      # (B, T, N)
            jnp.stack(lamdas, axis=0))                   # (T, 1)


if __name__ == "__main__":
    key = jax.random.PRNGKey(0)
    k1, k2, k3, k4, k5, k6 = jax.random.split(key, 6)

    f_in = 1 + NUM_STOCK + NUM_BROWNIAN
    num_steps = int(TIME_STEP / DT)

    # deterministic "checkpoint-free" system parameters (set_init_system_parameter shapes)
    mu0 = 0.05 + 0.02 * jax.random.normal(k1, (NUM_STOCK, 1), jnp.float32)             # (N, 1)
    sigma0 = 0.2 + 0.05 * jnp.abs(jax.random.normal(k2, (NUM_STOCK, NUM_BROWNIAN),
                                                    jnp.float32))                      # (N, M)
    zeta0 = 0.1 * jax.random.normal(k3, (NUM_BROWNIAN, 1), jnp.float32)                 # (M, 1)
    bt0 = 0.01 * jnp.abs(jax.random.normal(k4, (1,), jnp.float32))                      # (1,)
    system_param = {'geo_param': (mu0, sigma0), 'zeta': zeta0, 'bt': bt0}

    x = jax.random.normal(k5, (BATCH, f_in), jnp.float32)                               # (B, 1+N+M)
    net_params = init_subnet_params(k6, num_steps, f_in, HIDDEN_SIZE, NUM_STOCK)

    fwd = jax.jit(functools.partial(
        wealthmax_forward, market_sim=market_simulator, gamma=GAMMA, ce=CE,
        time_step=TIME_STEP, dt=DT, num_brownian=NUM_BROWNIAN))

    actions, params = fwd(x, system_param, net_params)
    actions = jax.block_until_ready(actions)
    params = jax.tree_util.tree_map(jax.block_until_ready, params)

    # shape contract from WealthMax.forward docstring
    assert actions.shape == (BATCH, num_steps, NUM_STOCK)
    assert params['mu'].shape == (BATCH, NUM_STOCK, num_steps)
    assert params['sigma'].shape == (BATCH, num_steps, NUM_STOCK, NUM_BROWNIAN)
    assert params['zeta'].shape == (BATCH, num_steps, NUM_BROWNIAN)
    assert params['bt'].shape == (num_steps, 1)
    assert params['lamda'].shape == (num_steps, 1)

    ref_actions, ref_lamda = _reference_forward(
        x, system_param, net_params, market_simulator, gamma=GAMMA, ce=CE,
        time_step=TIME_STEP, dt=DT, num_brownian=NUM_BROWNIAN)

    # actions go through MXU matmuls (multi-pass f32 on TPU) -> modest tolerance that
    # absorbs precision-pass differences between the Pallas and XLA dot lowerings;
    # lamda is pure VPU/XLU math -> tight tolerance.
    assert jnp.allclose(actions, ref_actions, rtol=2e-2, atol=2e-2), \
        float(jnp.max(jnp.abs(actions - ref_actions)))
    assert jnp.allclose(params['lamda'], ref_lamda, rtol=1e-5, atol=1e-6), \
        float(jnp.max(jnp.abs(params['lamda'] - ref_lamda)))

    # spot-check the recorded parameter trajectories against closed form
    ref_bt = bt0[0] + 5e-4 * jnp.arange(num_steps, dtype=jnp.float32)
    assert jnp.allclose(params['bt'][:, 0], ref_bt, rtol=1e-6, atol=1e-6)
    ref_mu_t = mu0[0, 0] * (1.01 ** jnp.arange(num_steps, dtype=jnp.float32))
    assert jnp.allclose(params['mu'][0, 0, :], ref_mu_t, rtol=1e-5, atol=1e-6)

    print("KERNEL_OK")
</pallas_src>

<mosaic_0001>
module attributes {stable_mosaic.version = 11 : i64} {
  func.func @_wealthmax_fused_kernel(%arg0: i32, %arg1: memref<1x8x8xf32, #tpu.memory_space<vmem>>, %arg2: memref<1x8x32xf32, #tpu.memory_space<vmem>>, %arg3: memref<1x1x32xf32, #tpu.memory_space<vmem>>, %arg4: memref<1x1x32xf32, #tpu.memory_space<vmem>>, %arg5: memref<1x1x32xf32, #tpu.memory_space<vmem>>, %arg6: memref<1x32x32xf32, #tpu.memory_space<vmem>>, %arg7: memref<1x1x32xf32, #tpu.memory_space<vmem>>, %arg8: memref<1x1x32xf32, #tpu.memory_space<vmem>>, %arg9: memref<1x1x32xf32, #tpu.memory_space<vmem>>, %arg10: memref<1x1x32xf32, #tpu.memory_space<vmem>>, %arg11: memref<1x1x1xf32, #tpu.memory_space<vmem>>, %arg12: memref<1x1x8xf32, #tpu.memory_space<vmem>>, %arg13: memref<1x1x8xf32, #tpu.memory_space<vmem>>, %arg14: memref<1x1x8xf32, #tpu.memory_space<vmem>>, %arg15: memref<1x1xf32, #tpu.memory_space<smem>>, %arg16: memref<1x8x1xf32, #tpu.memory_space<vmem>>, %arg17: memref<1x1x1xf32, #tpu.memory_space<vmem>>) attributes {dimension_semantics = [#tpu.dimension_semantics<parallel>], iteration_bounds = array<i64: 8>, scalar_prefetch = 0 : i64, scratch_operands = 0 : i64, tpu.core_type = #tpu.core_type<tc>, window_params = [{transform_indices = @transform_0, window_bounds = array<i64: 1, 8, 8>}, {transform_indices = @transform_1, window_bounds = array<i64: 1, 8, 32>}, {transform_indices = @transform_2, window_bounds = array<i64: 1, 1, 32>}, {transform_indices = @transform_3, window_bounds = array<i64: 1, 1, 32>}, {transform_indices = @transform_4, window_bounds = array<i64: 1, 1, 32>}, {transform_indices = @transform_5, window_bounds = array<i64: 1, 32, 32>}, {transform_indices = @transform_6, window_bounds = array<i64: 1, 1, 32>}, {transform_indices = @transform_7, window_bounds = array<i64: 1, 1, 32>}, {transform_indices = @transform_8, window_bounds = array<i64: 1, 1, 32>}, {transform_indices = @transform_9, window_bounds = array<i64: 1, 1, 32>}, {transform_indices = @transform_10, window_bounds = array<i64: 1, 1, 1>}, {transform_indices = @transform_11, window_bounds = array<i64: 1, 1, 8>}, {transform_indices = @transform_12, window_bounds = array<i64: 1, 1, 8>}, {transform_indices = @transform_13, window_bounds = array<i64: 1, 1, 8>}, {transform_indices = @transform_14, window_bounds = array<i64: 1, 1>}, {transform_indices = @transform_15, window_bounds = array<i64: 1, 8, 1>}, {transform_indices = @transform_16, window_bounds = array<i64: 1, 1, 1>}]} {
    %c0_i32 = arith.constant 0 : i32
    %0 = arith.cmpi sgt, %arg0, %c0_i32 : i32
    %1 = arith.extui %0 : i1 to i32
    %2 = arith.sitofp %1 : i32 to f32
    %c0 = arith.constant 0 : index
    %c0_0 = arith.constant 0 : index
    %c0_1 = arith.constant 0 : index
    %3 = vector.load %arg1[%c0, %c0_0, %c0_1] : memref<1x8x8xf32, #tpu.memory_space<vmem>>, vector<1x8x8xf32>
    %4 = vector.shape_cast %3 : vector<1x8x8xf32> to vector<8x8xf32>
    %c0_2 = arith.constant 0 : index
    %c0_3 = arith.constant 0 : index
    %c0_4 = arith.constant 0 : index
    %5 = vector.load %arg2[%c0_2, %c0_3, %c0_4] : memref<1x8x32xf32, #tpu.memory_space<vmem>>, vector<1x8x32xf32>
    %6 = vector.shape_cast %5 : vector<1x8x32xf32> to vector<8x32xf32>
    %cst = arith.constant dense<0.000000e+00> : vector<8x32xf32>
    %7 = tpu.matmul %4, %6, %cst {dimension_numbers = #tpu.dot_dimension_numbers<[1], [0], [0], [1], [0, 0, 1, 1], [], []>} : vector<8x8xf32>, vector<8x32xf32>, vector<8x32xf32> -> vector<8x32xf32>
    %c0_5 = arith.constant 0 : index
    %c0_6 = arith.constant 0 : index
    %c0_7 = arith.constant 0 : index
    %8 = vector.load %arg3[%c0_5, %c0_6, %c0_7] : memref<1x1x32xf32, #tpu.memory_space<vmem>>, vector<1x1x32xf32>
    %9 = vector.shape_cast %8 : vector<1x1x32xf32> to vector<1x32xf32>
    %10 = vector.broadcast %9 : vector<1x32xf32> to vector<8x32xf32>
    %11 = arith.addf %7, %10 : vector<8x32xf32>
    %cst_8 = arith.constant dense<0.000000e+00> : vector<32xf32>
    %12 = vector.multi_reduction <add>, %11, %cst_8 [0] : vector<8x32xf32> to vector<32xf32>
    %13 = vector.shape_cast %12 : vector<32xf32> to vector<1x32xf32>
    %cst_9 = arith.constant 8.000000e+00 : f32
    %14 = vector.broadcast %cst_9 : f32 to vector<1x32xf32>
    %15 = arith.divf %13, %14 : vector<1x32xf32>
    %16 = vector.broadcast %15 : vector<1x32xf32> to vector<8x32xf32>
    %17 = arith.subf %11, %16 : vector<8x32xf32>
    %18 = arith.mulf %17, %17 : vector<8x32xf32>
    %cst_10 = arith.constant dense<0.000000e+00> : vector<32xf32>
    %19 = vector.multi_reduction <add>, %18, %cst_10 [0] : vector<8x32xf32> to vector<32xf32>
    %20 = vector.shape_cast %19 : vector<32xf32> to vector<1x32xf32>
    %cst_11 = arith.constant 8.000000e+00 : f32
    %21 = vector.broadcast %cst_11 : f32 to vector<1x32xf32>
    %22 = arith.divf %20, %21 : vector<1x32xf32>
    %23 = vector.broadcast %15 : vector<1x32xf32> to vector<8x32xf32>
    %24 = arith.subf %11, %23 : vector<8x32xf32>
    %cst_12 = arith.constant 9.99999974E-6 : f32
    %25 = vector.broadcast %cst_12 : f32 to vector<1x32xf32>
    %26 = arith.addf %22, %25 : vector<1x32xf32>
    %27 = math.rsqrt %26 : vector<1x32xf32>
    %28 = vector.broadcast %27 : vector<1x32xf32> to vector<8x32xf32>
    %29 = arith.mulf %24, %28 : vector<8x32xf32>
    %c0_13 = arith.constant 0 : index
    %c0_14 = arith.constant 0 : index
    %c0_15 = arith.constant 0 : index
    %30 = vector.load %arg4[%c0_13, %c0_14, %c0_15] : memref<1x1x32xf32, #tpu.memory_space<vmem>>, vector<1x1x32xf32>
    %31 = vector.shape_cast %30 : vector<1x1x32xf32> to vector<1x32xf32>
    %32 = vector.broadcast %31 : vector<1x32xf32> to vector<8x32xf32>
    %33 = arith.mulf %29, %32 : vector<8x32xf32>
    %c0_16 = arith.constant 0 : index
    %c0_17 = arith.constant 0 : index
    %c0_18 = arith.constant 0 : index
    %34 = vector.load %arg5[%c0_16, %c0_17, %c0_18] : memref<1x1x32xf32, #tpu.memory_space<vmem>>, vector<1x1x32xf32>
    %35 = vector.shape_cast %34 : vector<1x1x32xf32> to vector<1x32xf32>
    %36 = vector.broadcast %35 : vector<1x32xf32> to vector<8x32xf32>
    %37 = arith.addf %33, %36 : vector<8x32xf32>
    %38 = vector.broadcast %2 : f32 to vector<8x32xf32>
    %39 = arith.mulf %38, %37 : vector<8x32xf32>
    %cst_19 = arith.constant 1.000000e+00 : f32
    %40 = arith.subf %cst_19, %2 : f32
    %41 = vector.broadcast %40 : f32 to vector<8x32xf32>
    %42 = arith.mulf %41, %11 : vector<8x32xf32>
    %43 = arith.addf %39, %42 : vector<8x32xf32>
    %cst_20 = arith.constant 0.000000e+00 : f32
    %44 = vector.broadcast %cst_20 : f32 to vector<8x32xf32>
    %45 = arith.maximumf %43, %44 : vector<8x32xf32>
    %c0_21 = arith.constant 0 : index
    %c0_22 = arith.constant 0 : index
    %c0_23 = arith.constant 0 : index
    %46 = vector.load %arg6[%c0_21, %c0_22, %c0_23] : memref<1x32x32xf32, #tpu.memory_space<vmem>>, vector<1x32x32xf32>
    %47 = vector.shape_cast %46 : vector<1x32x32xf32> to vector<32x32xf32>
    %cst_24 = arith.constant dense<0.000000e+00> : vector<8x32xf32>
    %48 = tpu.matmul %45, %47, %cst_24 {dimension_numbers = #tpu.dot_dimension_numbers<[1], [0], [0], [1], [0, 0, 1, 1], [], []>} : vector<8x32xf32>, vector<32x32xf32>, vector<8x32xf32> -> vector<8x32xf32>
    %c0_25 = arith.constant 0 : index
    %c0_26 = arith.constant 0 : index
    %c0_27 = arith.constant 0 : index
    %49 = vector.load %arg7[%c0_25, %c0_26, %c0_27] : memref<1x1x32xf32, #tpu.memory_space<vmem>>, vector<1x1x32xf32>
    %50 = vector.shape_cast %49 : vector<1x1x32xf32> to vector<1x32xf32>
    %51 = vector.broadcast %50 : vector<1x32xf32> to vector<8x32xf32>
    %52 = arith.addf %48, %51 : vector<8x32xf32>
    %cst_28 = arith.constant dense<0.000000e+00> : vector<32xf32>
    %53 = vector.multi_reduction <add>, %52, %cst_28 [0] : vector<8x32xf32> to vector<32xf32>
    %54 = vector.shape_cast %53 : vector<32xf32> to vector<1x32xf32>
    %cst_29 = arith.constant 8.000000e+00 : f32
    %55 = vector.broadcast %cst_29 : f32 to vector<1x32xf32>
    %56 = arith.divf %54, %55 : vector<1x32xf32>
    %57 = vector.broadcast %56 : vector<1x32xf32> to vector<8x32xf32>
    %58 = arith.subf %52, %57 : vector<8x32xf32>
    %59 = arith.mulf %58, %58 : vector<8x32xf32>
    %cst_30 = arith.constant dense<0.000000e+00> : vector<32xf32>
    %60 = vector.multi_reduction <add>, %59, %cst_30 [0] : vector<8x32xf32> to vector<32xf32>
    %61 = vector.shape_cast %60 : vector<32xf32> to vector<1x32xf32>
    %cst_31 = arith.constant 8.000000e+00 : f32
    %62 = vector.broadcast %cst_31 : f32 to vector<1x32xf32>
    %63 = arith.divf %61, %62 : vector<1x32xf32>
    %64 = vector.broadcast %56 : vector<1x32xf32> to vector<8x32xf32>
    %65 = arith.subf %52, %64 : vector<8x32xf32>
    %cst_32 = arith.constant 9.99999974E-6 : f32
    %66 = vector.broadcast %cst_32 : f32 to vector<1x32xf32>
    %67 = arith.addf %63, %66 : vector<1x32xf32>
    %68 = math.rsqrt %67 : vector<1x32xf32>
    %69 = vector.broadcast %68 : vector<1x32xf32> to vector<8x32xf32>
    %70 = arith.mulf %65, %69 : vector<8x32xf32>
    %c0_33 = arith.constant 0 : index
    %c0_34 = arith.constant 0 : index
    %c0_35 = arith.constant 0 : index
    %71 = vector.load %arg8[%c0_33, %c0_34, %c0_35] : memref<1x1x32xf32, #tpu.memory_space<vmem>>, vector<1x1x32xf32>
    %72 = vector.shape_cast %71 : vector<1x1x32xf32> to vector<1x32xf32>
    %73 = vector.broadcast %72 : vector<1x32xf32> to vector<8x32xf32>
    %74 = arith.mulf %70, %73 : vector<8x32xf32>
    %c0_36 = arith.constant 0 : index
    %c0_37 = arith.constant 0 : index
    %c0_38 = arith.constant 0 : index
    %75 = vector.load %arg9[%c0_36, %c0_37, %c0_38] : memref<1x1x32xf32, #tpu.memory_space<vmem>>, vector<1x1x32xf32>
    %76 = vector.shape_cast %75 : vector<1x1x32xf32> to vector<1x32xf32>
    %77 = vector.broadcast %76 : vector<1x32xf32> to vector<8x32xf32>
    %78 = arith.addf %74, %77 : vector<8x32xf32>
    %79 = vector.broadcast %2 : f32 to vector<8x32xf32>
    %80 = arith.mulf %79, %78 : vector<8x32xf32>
    %cst_39 = arith.constant 1.000000e+00 : f32
    %81 = arith.subf %cst_39, %2 : f32
    %82 = vector.broadcast %81 : f32 to vector<8x32xf32>
    %83 = arith.mulf %82, %52 : vector<8x32xf32>
    %84 = arith.addf %80, %83 : vector<8x32xf32>
    %cst_40 = arith.constant 0.000000e+00 : f32
    %85 = vector.broadcast %cst_40 : f32 to vector<8x32xf32>
    %86 = arith.maximumf %84, %85 : vector<8x32xf32>
    %c0_41 = arith.constant 0 : index
    %c0_42 = arith.constant 0 : index
    %c0_43 = arith.constant 0 : index
    %87 = vector.load %arg10[%c0_41, %c0_42, %c0_43] : memref<1x1x32xf32, #tpu.memory_space<vmem>>, vector<1x1x32xf32>
    %88 = vector.shape_cast %87 : vector<1x1x32xf32> to vector<1x32xf32>
    %89 = vector.broadcast %88 : vector<1x32xf32> to vector<8x32xf32>
    %90 = arith.mulf %86, %89 : vector<8x32xf32>
    %cst_44 = arith.constant dense<0.000000e+00> : vector<8xf32>
    %91 = vector.multi_reduction <add>, %90, %cst_44 [1] : vector<8x32xf32> to vector<8xf32>
    %92 = vector.shape_cast %91 : vector<8xf32> to vector<8x1xf32>
    %c0_45 = arith.constant 0 : index
    %c0_46 = arith.constant 0 : index
    %c0_47 = arith.constant 0 : index
    %93 = vector.load %arg11[%c0_45, %c0_46, %c0_47] : memref<1x1x1xf32, #tpu.memory_space<vmem>>, vector<1x1x1xf32>
    %94 = vector.shape_cast %93 : vector<1x1x1xf32> to vector<1x1xf32>
    %95 = vector.broadcast %94 : vector<1x1xf32> to vector<8x1xf32>
    %96 = arith.addf %92, %95 : vector<8x1xf32>
    %c0_48 = arith.constant 0 : index
    %c0_49 = arith.constant 0 : index
    %c0_50 = arith.constant 0 : index
    %97 = vector.load %arg16[%c0_48, %c0_49, %c0_50] : memref<1x8x1xf32, #tpu.memory_space<vmem>>, vector<1x8x1xf32>
    %98 = vector.shape_cast %97 : vector<1x8x1xf32> to vector<8x1xf32>
    %99 = vector.shape_cast %96 : vector<8x1xf32> to vector<1x8x1xf32>
    tpu.vector_store %arg16[%c0_48, %c0_49, %c0_50], %99 {strides = array<i32>} : memref<1x8x1xf32, #tpu.memory_space<vmem>>, vector<1x8x1xf32>,
    %c0_51 = arith.constant 0 : index
    %c0_52 = arith.constant 0 : index
    %c0_53 = arith.constant 0 : index
    %100 = vector.load %arg12[%c0_51, %c0_52, %c0_53] : memref<1x1x8xf32, #tpu.memory_space<vmem>>, vector<1x1x8xf32>
    %101 = vector.shape_cast %100 : vector<1x1x8xf32> to vector<1x8xf32>
    %c0_54 = arith.constant 0 : index
    %c0_55 = arith.constant 0 : index
    %c0_56 = arith.constant 0 : index
    %102 = vector.load %arg13[%c0_54, %c0_55, %c0_56] : memref<1x1x8xf32, #tpu.memory_space<vmem>>, vector<1x1x8xf32>
    %103 = vector.shape_cast %102 : vector<1x1x8xf32> to vector<1x8xf32>
    %c0_57 = arith.constant 0 : index
    %c0_58 = arith.constant 0 : index
    %c0_59 = arith.constant 0 : index
    %104 = vector.load %arg14[%c0_57, %c0_58, %c0_59] : memref<1x1x8xf32, #tpu.memory_space<vmem>>, vector<1x1x8xf32>
    %105 = vector.shape_cast %104 : vector<1x1x8xf32> to vector<1x8xf32>
    %c0_60 = arith.constant 0 : index
    %c0_61 = arith.constant 0 : index
    %106 = memref.load %arg15[%c0_60, %c0_61] : memref<1x1xf32, #tpu.memory_space<smem>>
    %107 = arith.mulf %103, %103 : vector<1x8xf32>
    %cst_62 = arith.constant 1.000000e+00 : f32
    %108 = vector.broadcast %cst_62 : f32 to vector<1x8xf32>
    %109 = arith.divf %108, %107 : vector<1x8xf32>
    %110 = arith.mulf %109, %103 : vector<1x8xf32>
    %111 = arith.mulf %110, %105 : vector<1x8xf32>
    %cst_63 = arith.constant 0.699999988 : f32
    %112 = arith.subf %cst_63, %106 : f32
    %113 = arith.mulf %101, %111 : vector<1x8xf32>
    %114 = vector.broadcast %112 : f32 to vector<1x8xf32>
    %115 = arith.addf %114, %113 : vector<1x8xf32>
    %116 = arith.mulf %101, %101 : vector<1x8xf32>
    %117 = arith.mulf %116, %109 : vector<1x8xf32>
    %118 = tpu.concatenate %115, %117 in 0 : vector<1x8xf32>, vector<1x8xf32> -> vector<2x8xf32>
    %cst_64 = arith.constant dense<0.000000e+00> : vector<2xf32>
    %119 = vector.multi_reduction <add>, %118, %cst_64 [1] : vector<2x8xf32> to vector<2xf32>
    %120 = vector.shape_cast %119 : vector<2xf32> to vector<2x1xf32>
    %121 = vector.extract_strided_slice %120 {offsets = [0, 0], sizes = [1, 1], strides = [1, 1]} : vector<2x1xf32> to vector<1x1xf32>
    %cst_65 = arith.constant 1.000000e-01 : f32
    %122 = vector.broadcast %cst_65 : f32 to vector<1x1xf32>
    %123 = arith.mulf %122, %121 : vector<1x1xf32>
    %124 = vector.extract_strided_slice %120 {offsets = [1, 0], sizes = [1, 1], strides = [1, 1]} : vector<2x1xf32> to vector<1x1xf32>
    %125 = arith.divf %123, %124 : vector<1x1xf32>
    %cst_66 = arith.constant 1.000000e+00 : f32
    %126 = vector.broadcast %cst_66 : f32 to vector<1x1xf32>
    %127 = arith.subf %125, %126 : vector<1x1xf32>
    %cst_67 = arith.constant 0.000000e+00 : f32
    %128 = vector.broadcast %cst_67 : f32 to vector<1x1xf32>
    %129 = arith.maximumf %127, %128 : vector<1x1xf32>
    %c0_68 = arith.constant 0 : index
    %c0_69 = arith.constant 0 : index
    %c0_70 = arith.constant 0 : index
    %130 = vector.load %arg17[%c0_68, %c0_69, %c0_70] : memref<1x1x1xf32, #tpu.memory_space<vmem>>, vector<1x1x1xf32>
    %131 = vector.shape_cast %130 : vector<1x1x1xf32> to vector<1x1xf32>
    %132 = vector.shape_cast %129 : vector<1x1xf32> to vector<1x1x1xf32>
    tpu.vector_store %arg17[%c0_68, %c0_69, %c0_70], %132 {strides = array<i32>} : memref<1x1x1xf32, #tpu.memory_space<vmem>>, vector<1x1x1xf32>,
    return
  }
  func.func @transform_0(%arg0: i32) -> (i32, i32, i32) {
    %c0_i32 = arith.constant 0 : i32
    %c0_i32_0 = arith.constant 0 : i32
    %c0_i32_1 = arith.constant 0 : i32
    return %arg0, %c0_i32, %c0_i32_0 : i32, i32, i32
  }
  func.func @transform_1(%arg0: i32) -> (i32, i32, i32) {
    %c0_i32 = arith.constant 0 : i32
    %c0_i32_0 = arith.constant 0 : i32
    %c0_i32_1 = arith.constant 0 : i32
    return %arg0, %c0_i32, %c0_i32_0 : i32, i32, i32
  }
  func.func @transform_2(%arg0: i32) -> (i32, i32, i32) {
    %c0_i32 = arith.constant 0 : i32
    %c0_i32_0 = arith.constant 0 : i32
    %c0_i32_1 = arith.constant 0 : i32
    return %arg0, %c0_i32, %c0_i32_0 : i32, i32, i32
  }
  func.func @transform_3(%arg0: i32) -> (i32, i32, i32) {
    %c0_i32 = arith.constant 0 : i32
    %c0_i32_0 = arith.constant 0 : i32
    %c0_i32_1 = arith.constant 0 : i32
    return %arg0, %c0_i32, %c0_i32_0 : i32, i32, i32
  }
  func.func @transform_4(%arg0: i32) -> (i32, i32, i32) {
    %c0_i32 = arith.constant 0 : i32
    %c0_i32_0 = arith.constant 0 : i32
    %c0_i32_1 = arith.constant 0 : i32
    return %arg0, %c0_i32, %c0_i32_0 : i32, i32, i32
  }
  func.func @transform_5(%arg0: i32) -> (i32, i32, i32) {
    %c0_i32 = arith.constant 0 : i32
    %c0_i32_0 = arith.constant 0 : i32
    %c0_i32_1 = arith.constant 0 : i32
    return %arg0, %c0_i32, %c0_i32_0 : i32, i32, i32
  }
  func.func @transform_6(%arg0: i32) -> (i32, i32, i32) {
    %c0_i32 = arith.constant 0 : i32
    %c0_i32_0 = arith.constant 0 : i32
    %c0_i32_1 = arith.constant 0 : i32
    return %arg0, %c0_i32, %c0_i32_0 : i32, i32, i32
  }
  func.func @transform_7(%arg0: i32) -> (i32, i32, i32) {
    %c0_i32 = arith.constant 0 : i32
    %c0_i32_0 = arith.constant 0 : i32
    %c0_i32_1 = arith.constant 0 : i32
    return %arg0, %c0_i32, %c0_i32_0 : i32, i32, i32
  }
  func.func @transform_8(%arg0: i32) -> (i32, i32, i32) {
    %c0_i32 = arith.constant 0 : i32
    %c0_i32_0 = arith.constant 0 : i32
    %c0_i32_1 = arith.constant 0 : i32
    return %arg0, %c0_i32, %c0_i32_0 : i32, i32, i32
  }
  func.func @transform_9(%arg0: i32) -> (i32, i32, i32) {
    %c0_i32 = arith.constant 0 : i32
    %c0_i32_0 = arith.constant 0 : i32
    %c0_i32_1 = arith.constant 0 : i32
    return %arg0, %c0_i32, %c0_i32_0 : i32, i32, i32
  }
  func.func @transform_10(%arg0: i32) -> (i32, i32, i32) {
    %c0_i32 = arith.constant 0 : i32
    %c0_i32_0 = arith.constant 0 : i32
    %c0_i32_1 = arith.constant 0 : i32
    return %arg0, %c0_i32, %c0_i32_0 : i32, i32, i32
  }
  func.func @transform_11(%arg0: i32) -> (i32, i32, i32) {
    %c0_i32 = arith.constant 0 : i32
    %c0_i32_0 = arith.constant 0 : i32
    %c0_i32_1 = arith.constant 0 : i32
    return %arg0, %c0_i32, %c0_i32_0 : i32, i32, i32
  }
  func.func @transform_12(%arg0: i32) -> (i32, i32, i32) {
    %c0_i32 = arith.constant 0 : i32
    %c0_i32_0 = arith.constant 0 : i32
    %c0_i32_1 = arith.constant 0 : i32
    return %arg0, %c0_i32, %c0_i32_0 : i32, i32, i32
  }
  func.func @transform_13(%arg0: i32) -> (i32, i32, i32) {
    %c0_i32 = arith.constant 0 : i32
    %c0_i32_0 = arith.constant 0 : i32
    %c0_i32_1 = arith.constant 0 : i32
    return %arg0, %c0_i32, %c0_i32_0 : i32, i32, i32
  }
  func.func @transform_14(%arg0: i32) -> (i32, i32) {
    %c0_i32 = arith.constant 0 : i32
    %c0_i32_0 = arith.constant 0 : i32
    %c0_i32_1 = arith.constant 0 : i32
    return %c0_i32, %c0_i32_0 : i32, i32
  }
  func.func @transform_15(%arg0: i32) -> (i32, i32, i32) {
    %c0_i32 = arith.constant 0 : i32
    %c0_i32_0 = arith.constant 0 : i32
    %c0_i32_1 = arith.constant 0 : i32
    return %arg0, %c0_i32, %c0_i32_0 : i32, i32, i32
  }
  func.func @transform_16(%arg0: i32) -> (i32, i32, i32) {
    %c0_i32 = arith.constant 0 : i32
    %c0_i32_0 = arith.constant 0 : i32
    %c0_i32_1 = arith.constant 0 : i32
    return %arg0, %c0_i32, %c0_i32_0 : i32, i32, i32
  }
}

</mosaic_0001>

<bundles_post_ra>
// kernel: custom-call.1
= control target key start
LH: loop header
LB: loop body
LE: loop exit
PB: predicated region body
PF: predicated region fallthrough
CT: control target
= control target key end

     0   :  { %s6_s0 = inlined_call_operand.vmem [shape: f32[8,8,1,1], index: 0, kind: output, shape index: {}]  }

// kernel: custom-call.4
= control target key start
LH: loop header
LB: loop body
LE: loop exit
PB: predicated region body
PF: predicated region fallthrough
CT: control target
= control target key end

     0   :  { %s6_s0 = inlined_call_operand.vmem [shape: f32[8,1], index: 0, kind: output, shape index: {}]  }

// kernel: custom-call
= control target key start
LH: loop header
LB: loop body
LE: loop exit
PB: predicated region body
PF: predicated region fallthrough
CT: control target
= control target key end

     0   :  { %s6_s0 = inlined_call_operand.vmem [shape: f32[8,8,3], index: 0, kind: output, shape index: {}]  }

// kernel: wealthmax_forward.1
= control target key start
LH: loop header
LB: loop body
LE: loop exit
PB: predicated region body
PF: predicated region fallthrough
CT: control target
= control target key end

     0   :  { %s1405_s23 = smov 0   ;;  %s1507_s0 = inlined_call_operand.vmem [shape: f32[8,8,8], index: 0, kind: input, shape index: {}]   ;;  %s1508_s1 = inlined_call_operand.vmem [shape: f32[8,8,32], index: 1, kind: input, shape index: {}]   ;;  %s1509_s2 = inlined_call_operand.vmem [shape: f32[8,1,32], index: 2, kind: input, shape index: {}]   ;;  %s1510_s3 = inlined_call_operand.vmem [shape: f32[8,1,32], index: 3, kind: input, shape index: {}]   ;;  %s1511_s4 = inlined_call_operand.vmem [shape: f32[8,1,32], index: 4, kind: input, shape index: {}]   ;;  %s1512_s5 = inlined_call_operand.vmem [shape: f32[8,32,32], index: 5, kind: input, shape index: {}]   ;;  %s1513_s6 = inlined_call_operand.vmem [shape: f32[8,1,32], index: 6, kind: input, shape index: {}]   ;;  %s1514_s7 = inlined_call_operand.vmem [shape: f32[8,1,32], index: 7, kind: input, shape index: {}]   ;;  %s1515_s8 = inlined_call_operand.vmem [shape: f32[8,1,32], index: 8, kind: input, shape index: {}]   ;;  %s1516_s9 = inlined_call_operand.vmem [shape: f32[8,1,32], index: 9, kind: input, shape index: {}]   ;;  %s1517_s10 = inlined_call_operand.vmem [shape: f32[8,1,1], index: 10, kind: input, shape index: {}]   ;;  %s1518_s11 = inlined_call_operand.vmem [shape: f32[8,1,8], index: 11, kind: input, shape index: {}]   ;;  %s1519_s12 = inlined_call_operand.vmem [shape: f32[8,1,8], index: 12, kind: input, shape index: {}]   ;;  %s1520_s13 = inlined_call_operand.vmem [shape: f32[8,1,8], index: 13, kind: input, shape index: {}]   ;;  %s1521_s14 = inlined_call_operand.<no memory space> [shape: f32[1,1], index: 14, kind: input, shape index: {}]   ;;  %s1522_s15 = inlined_call_operand.vmem [shape: f32[8,8,1], index: 15, kind: output, shape index: {0}]   ;;  %s1523_s16 = inlined_call_operand.vmem [shape: f32[8,1,1], index: 16, kind: output, shape index: {1}]  }
   0x1   :  { %1524 = sst [smem:[#allocation3_spill]] %s1507_s0 }
   0x2   :  { %22 = sst [smem:[#allocation2]] %s1521_s14 }
   0x3 LB: > { %s1411_s24 = sadd.s32 4294967295, %s1312_s23   ;;  %p1238_p0 = scmp.ge.s32.totalorder %s1312_s23, 1  ;;  %s1312_s23 = sphi %s1405_s23, %s28_s23  }
   0x4   : > { %p572_p1 = scmp.lt.s32.totalorder %s1312_s23, 9 }
   0x6   : > { %p573_p2 = pnand %p1238_p0, %p572_p1 }
   0x7   : > { %p665_p3 = scmp.lt.s32.totalorder (!%p573_p2), %s1411_s24, 7  ;;  %v1314_v0 = vmov (!%p573_p2), 0.0   ;;  %vm1315_vm0 = vmmov (!%p573_p2), 0   ;;  %vm730_vm1 = vcmask (!%p573_p2), 64512   ;;  %s1525_s0 = sld [smem:[#allocation3_spill]] (!%p573_p2)  ;;  %v1316_v6 = vmov (!%p573_p2), 0.0|0.0  }
   0x8   : > { %576 = sbr.rel (%p573_p2) target bundleno = 715 (0x2cb), region = 80  ;;  %1265 = vmatprep.subr.mxu0 (!%p573_p2), %v1314_v0  ;;  %1267 = vmatprep.mubr.msk.f32.mxu0 (!%p573_p2), %vm1315_vm0, %v1314_v0  ;;  %vm804_vm2 = vcmask (!%p573_p2), 261120   ;;  %p718_p4 = scmp.gt.s32.totalorder (!%p573_p2), %s1411_s24, 0  ;;  %v1012_v49 = vlaneseq (!%p573_p2)  ;;  %vm1017_vm3 = vcmask (!%p573_p2), 1040384   ;;  %vm1019_vm4 = vcmask (!%p573_p2), 58368  }
   0x9   : > { %1278 = vmatprep.mubr.msk.f32.mxu1 (!%p573_p2), %vm1315_vm0, %v1314_v0  ;;  %1281 = vmatprep.subr.bf16.mxu1 (!%p573_p2), %v1316_v6  ;;  %vm1031_vm5 = vcmask (!%p573_p2), 0   ;;  %vm994_vm6 = vcmask (!%p573_p2), 7168  }
   0xa   : > { %v1013_v54 = vshrl.u32 (!%p573_p2), %v1012_v49, 7 }
   0xc   : > { %v1014_v57 = vsub.s32 (!%p573_p2), 0, %v1013_v54 }
   0xf   : > { %s1417_s14 = scalar_select %p665_p3, %s1411_s24, 7 }
  0x11   : > { %s1420_s25 = sshll.u32 %s1417_s14, 3  ;;  %s1257_s18 = sshll.u32 %s1417_s14, 5 }
  0x12   : > { %s672_s28 = scalar_lea.vmem %s1508_s1, %s1420_s25  ;;  %s668_s17 = scalar_lea.vmem %s1525_s0, %s1420_s25 }
  0x13   : > { %v722_v1 = vld [vmem:[%s672_s28] sm:$0xff]  ;;  %s686_s21 = scalar_lea.vmem %s1512_s5, %s1257_s18  ;;  %s675_s27 = scalar_lea.vmem %s1509_s2, %s1417_s14 }
  0x14   : > { %1266 = vmatpush3.msra.mxu0 %v722_v1  ;;  %v721_v2 = vld [vmem:[%s668_s17] sm:$0xff]  ;;  %v851_v4 = vld [vmem:[%s686_s21 + $0x8] sm:$0xff]  ;;  %v852_v7 = vld [vmem:[%s686_s21 + $0x10] sm:$0xff]  ;;  %s719_s28 = scalar_select %p718_p4, 1, 0 }
  0x15   : > { %1268 = vmatmul.mubr.msk.f32.vlgmr.msra.gmra.mrb[0].mxu0 %vm730_vm1, %v721_v2  ;;  %v850_v3 = vld [vmem:[%s686_s21] sm:$0xff]  ;;  %v853_v8 = vld [vmem:[%s686_s21 + $0x18] sm:$0xff]  ;;  %s678_s17 = scalar_lea.vmem %s1510_s3, %s1417_s14  ;;  %s681_s20 = scalar_lea.vmem %s1511_s4, %s1417_s14 }
  0x16   : > { %v1282_v5 = vpack.c.bf16 %v851_v4, %v850_v3  ;;  %v1285_v9 = vpack.c.bf16 %v853_v8, %v852_v7  ;;  %v1244_v10 = vld [vmem:[%s675_s27] ss:$0 sm:$0xff]  ;;  %s720_s29 = scvt.s32.f32 %s719_s28  ;;  %s707_s26 = scalar_lea.vmem %s1519_s12, %s1417_s14 }
  0x17   : > { %v1246_v34 = vld [vmem:[%s678_s17] ss:$0 sm:$0xff]  ;;  %s999_s27 = sld [smem:[#allocation2]]  ;;  %s704_s30 = scalar_lea.vmem %s1518_s11, %s1417_s14 }
  0x18   : > { %1283 = vmatpush3.bf16.msra.mxu1 %v1282_v5  ;;  %s1449_s21 = ssub.f32 1.0, %s720_s29  ;;  %v1247_v36 = vld [vmem:[%s681_s20] ss:$0 sm:$0xff]  ;;  %v1451_v38 = vstv %s720_s29  ;;  %s710_s18 = scalar_lea.vmem %s1520_s13, %s1417_s14 }
  0x19   : > { %1284 = vmatprep.subr.bf16.mxu1 %v1316_v6  ;;  %v997_v45 = vld [vmem:[%s707_s26] sm:$0x1]  ;;  %s689_s22 = scalar_lea.vmem %s1513_s6, %s1417_s14  ;;  %s692_s28 = scalar_lea.vmem %s1514_s7, %s1417_s14 }
  0x1a   : > { %v846_v39 = vstv %s1449_s21  ;;  %v1000_v46 = vmul.f32 %v997_v45, %v997_v45  ;;  %v996_v50 = vld [vmem:[%s704_s30] sm:$0x1]  ;;  %s695_s0 = scalar_lea.vmem %s1515_s8, %s1417_s14  ;;  %s717_s24 = scalar_lea.vmem %s1523_s16, %s1417_s14 }
  0x1b   : > { %v998_v51 = vld [vmem:[%s710_s18] sm:$0x1]  ;;  %v1009_v53 = vmul.f32 %v996_v50, %v996_v50  ;;  %s714_s30 = scalar_lea.vmem %s1522_s15, %s1420_s25 }
  0x1c   : > { %1286 = vmatpush3.bf16.msra.mxu1 %v1285_v9  ;;  %v1248_v63 = vld [vmem:[%s689_s22] ss:$0 sm:$0xff] }
  0x1d   : > { %s1005_s19 = ssub.f32 0.7, %s999_s27  ;;  %s701_s27 = scalar_lea.vmem %s1517_s10, %s1417_s14 }
  0x1f   : > { %v1007_v58 = vstv %s1005_s19  ;;  %s698_s19 = scalar_lea.vmem %s1516_s9, %s1417_s14 }
  0xe8   : > { %v800_v11 = vpop.f32.mrb[0].mxu0 }
  0xe9   : > { %v801_v12 = vadd.f32 %v1244_v10, %v800_v11  ;;  %v1269_v13 = vpop.f32.mrb[1].mxu0 }
  0xeb   : > { %v805_v14 = vsel %vm804_vm2, %v801_v12, 0.0  ;;  %v847_v42 = vmul.f32 %v846_v39, %v801_v12 }
  0xec   : > { %v806_v15 = vrot.slane %v805_v14, 4 }
  0xee   : > { %v807_v16 = vadd.f32 %v806_v15, %v805_v14 }
  0xf0   : > { %v808_v17 = vrot.slane %v807_v16, 2 }
  0xf2   : > { %v809_v18 = vadd.f32 %v808_v17, %v807_v16 }
  0xf4   : > { %v810_v19 = vrot.slane %v809_v18, 1 }
  0xf6   : > { %v811_v20 = vadd.f32 %v810_v19, %v809_v18 }
  0xf8   : > { %v813_v21 = vmul.f32 0.125, %v811_v20 }
  0xfa   : > { %v814_v22 = vsub.f32 %v801_v12, %v813_v21 }
  0xfc   : > { %v815_v23 = vmul.f32 %v814_v22, %v814_v22 }
  0xfe   : > { %v816_v24 = vsel %vm804_vm2, %v815_v23, 0.0  ;;  %v1250_v23 = vld [vmem:[%s692_s28] ss:$0 sm:$0xff] }
  0xff   : > { %v817_v25 = vrot.slane %v816_v24, 4 }
 0x101   : > { %v818_v26 = vadd.f32 %v817_v25, %v816_v24 }
 0x103   : > { %v819_v27 = vrot.slane %v818_v26, 2 }
 0x105   : > { %v820_v28 = vadd.f32 %v819_v27, %v818_v26  ;;  %v1251_v26 = vld [vmem:[%s695_s0] ss:$0 sm:$0xff] }
 0x107   : > { %v821_v29 = vrot.slane %v820_v28, 1 }
 0x109   : > { %v822_v30 = vadd.f32 %v821_v29, %v820_v28 }
 0x10b   : > { %v823_v31 = vmul.f32 0.125, %v822_v30 }
 0x10d   : > { %v824_v32 = vadd.f32 1e-05, %v823_v31 }
 0x10f   : > { %1298 = vrsqrt.f32 %v824_v32 }
 0x110   : > { %1300 = vrcp.f32 %v1000_v46 }
 0x119   : > { %v1299_v33 = vpop.eup %1298 }
 0x11a   : > { %v826_v35 = vmul.f32 %v1299_v33, %v814_v22  ;;  %v1301_v47 = vpop.eup %1300  ;;  %v1252_v33 = vld [vmem:[%s698_s19] ss:$0 sm:$0xff] }
 0x11b   : > { %v1003_v48 = vmul.f32 %v1301_v47, %v997_v45  ;;  %v1010_v56 = vmul.f32 %v1301_v47, %v1009_v53 }
 0x11c   : > { %v834_v37 = vmul.f32 %v1246_v34, %v826_v35 }
 0x11d   : > { %v1004_v52 = vmul.f32 %v1003_v48, %v998_v51  ;;  %v1015_v60 = vrot.slane %v1010_v56, %v1014_v57 }
 0x11e   : > { %v842_v40 = vadd.f32 %v1247_v36, %v834_v37 }
 0x11f   : > { %v1006_v55 = vmul.f32 %v1004_v52, %v996_v50 }
 0x120   : > { %v844_v41 = vmul.f32 %v1451_v38, %v842_v40 }
 0x121   : > { %v1008_v59 = vadd.f32 %v1007_v58, %v1006_v55 }
 0x122   : > { %v848_v43 = vadd.f32 %v847_v42, %v844_v41 }
 0x123   : > { %v1018_v61 = vsel %vm1017_vm3, %v1008_v59, %v1015_v60 }
 0x124   : > { %v849_v44 = vmax.f32 %v848_v43, 0.0  ;;  %v1020_v62 = vsel %vm1019_vm4, %v1018_v61, 0.0 }
 0x125   : > { %1021 = vadd.xlane.f32.xlu0 %v1020_v62 }
 0x126   : > { %1279 = vmatmul.mubr.msk.f32.vlgmr.msra.gmra.mrb[0].mxu1 %vm804_vm2, %v849_v44 }
 0x1b2   : > { %v1022_v25 = vpop.xlane.xlu0 %1021 }
 0x1b3   : > { %v1025_v27 = vrot.slane %v1022_v25, 1  ;;  %v1023_v35 = vmul.f32 0.1, %v1022_v25 }
 0x1f9   : > { %v930_v0 = vpop.f32.mrb[0].mxu1 }
 0x1fa   : > { %v931_v1 = vadd.f32 %v1248_v63, %v930_v0  ;;  %v1280_v2 = vpop.f32.mrb[1].mxu1 }
 0x1fc   : > { %v934_v3 = vsel %vm804_vm2, %v931_v1, 0.0  ;;  %v972_v30 = vmul.f32 %v931_v1, %v846_v39 }
 0x1fd   : > { %v935_v4 = vrot.slane %v934_v3, 4 }
 0x1ff   : > { %v936_v5 = vadd.f32 %v935_v4, %v934_v3 }
 0x201   : > { %v937_v6 = vrot.slane %v936_v5, 2 }
 0x203   : > { %v938_v7 = vadd.f32 %v937_v6, %v936_v5 }
 0x205   : > { %v939_v8 = vrot.slane %v938_v7, 1 }
 0x207   : > { %v940_v9 = vadd.f32 %v939_v8, %v938_v7 }
 0x209   : > { %v941_v10 = vmul.f32 0.125, %v940_v9 }
 0x20b   : > { %v942_v11 = vsub.f32 %v931_v1, %v941_v10 }
 0x20d   : > { %v943_v12 = vmul.f32 %v942_v11, %v942_v11 }
 0x20f   : > { %v944_v13 = vsel %vm804_vm2, %v943_v12, 0.0 }
 0x210   : > { %v945_v14 = vrot.slane %v944_v13, 4 }
 0x212   : > { %v946_v15 = vadd.f32 %v945_v14, %v944_v13 }
 0x214   : > { %v947_v16 = vrot.slane %v946_v15, 2 }
 0x216   : > { %v948_v17 = vadd.f32 %v947_v16, %v946_v15 }
 0x218   : > { %v949_v18 = vrot.slane %v948_v17, 1 }
 0x21a   : > { %v950_v19 = vadd.f32 %v949_v18, %v948_v17 }
 0x21c   : > { %v951_v20 = vmul.f32 0.125, %v950_v19 }
 0x21e   : > { %v952_v21 = vadd.f32 1e-05, %v951_v20 }
 0x220   : > { %1302 = vrsqrt.f32 %v952_v21 }
 0x221   : > { %1304 = vrcp.f32 %v1025_v27 }
 0x22a   : > { %v1303_v22 = vpop.eup %1302 }
 0x22b   : > { %v954_v24 = vmul.f32 %v1303_v22, %v942_v11  ;;  %v1305_v37 = vpop.eup %1304 }
 0x22c   : > { %v1028_v41 = vmul.f32 %v1305_v37, %v1023_v35 }
 0x22d   : > { %v962_v28 = vmul.f32 %v1250_v23, %v954_v24 }
 0x22e   : > { %v1254_v42 = vadd.f32 -1.0, %v1028_v41 }
 0x22f   : > { %v970_v29 = vadd.f32 %v1251_v26, %v962_v28 }
 0x230   : > { %v1030_v39 = vmax.f32 %v1254_v42, 0.0 }
 0x231   : > { %v971_v31 = vmul.f32 %v970_v29, %v1451_v38  ;;  %v1253_v38 = vld [vmem:[%s701_s27] ss:$0 sm:$0xff] }
 0x232   : > { %1032 = vst.msk [vmem:[%s717_s24] sm:$0x1] %vm1031_vm5, %v1030_v39 }
 0x233   : > { %v973_v32 = vadd.f32 %v972_v30, %v971_v31 }
 0x235   : > { %v974_v34 = vmax.f32 %v973_v32, 0.0 }
 0x237   : > { %v982_v36 = vmul.f32 %v1252_v33, %v974_v34 }
 0x239   : > { %v983_v40 = vsel %vm804_vm2, %v982_v36, 0.0 }
 0x23a   : > { %984 = vadd.xlane.f32.xlu0 %v983_v40 }
 0x2c7   : > { %v985_v43 = vpop.xlane.xlu0 %984 }
 0x2c8   : > { %v993_v44 = vadd.f32 %v1253_v38, %v985_v43 }
 0x2ca   : > { %995 = vst.msk [vmem:[%s714_s30] sm:$0xff] %vm994_vm6, %v993_v44 }
 0x2cb PF: > { %s28_s23 = sadd.s32 1, %s1312_s23  }
 0x2cc   : > { %p25_p5 = scmp.ge.s32.totalorder %s28_s23, 10  }
 0x2ce   :  { %27 = sbr.rel (!%p25_p5) target bundleno = 3 (0x3), region = 161 }

</bundles_post_ra>
